<compile_context>
chip_gen: v7x
topology: tpu7x:2x2x1
jax: 0.10.0
libtpu: 0.0.40
codegen_flags: <defaults>
</compile_context>

<pallas_src>
import jax
import jax.numpy as jnp
from jax.experimental import pallas as pl
from jax.experimental.pallas import tpu as pltpu  # noqa: F401  (TPU backend)

# ---- problem sizes ----------------------------------------------------------
B = 2              # batch
L = 16             # input_size (sequence length after unsqueeze(1))
K = 3              # kernel size (both convs)
C1 = 8             # num_channels[0]
C2 = 16            # num_channels[1]
OUT = 1            # output_size
L1 = L - K + 1     # 14, conv1 output length (valid conv)
L2 = L1 - K + 1    # 12, conv2 output length (valid conv)


# -----------------------------------------------------------------------------
# Pallas kernel: whole forward pass, all operands in VMEM, no grid.
# -----------------------------------------------------------------------------
def _cnn1d_kernel(xt_ref, w1_ref, b1_ref, w2_ref, b2_ref, wf_ref, bf_ref, out_ref):
    # xt_ref : (L, B)        input, positions on sublanes, batch on lanes
    # w1_ref : (K, C1)       conv1 weight, w1[k, o] = torch_w1[o, 0, k]
    # b1_ref : (1, C1)
    # w2_ref : (K*C1, C2)    conv2 weight, w2[k*C1 + i, o] = torch_w2[o, i, k]
    # b2_ref : (1, C2)
    # wf_ref : (C2, OUT)     fc weight (transposed torch layout)
    # bf_ref : (1, OUT)
    # out_ref: (B, OUT)
    xt = xt_ref[...]
    w1 = w1_ref[...]
    b1 = b1_ref[...]
    w2 = w2_ref[...]
    b2 = b2_ref[...]

    # ---- conv1 (valid, k=3): one matmul for the whole batch ------------------
    # Tap matrix X[b*L1 + t, k] = x[b, t + k]
    x_taps = jnp.concatenate(
        [jnp.concatenate([xt[k:k + L1, b:b + 1] for k in range(K)], axis=1)
         for b in range(B)],
        axis=0)                                                  # (B*L1, K)
    h1 = jnp.maximum(
        jnp.dot(x_taps, w1, preferred_element_type=jnp.float32) + b1,
        0.0)                                                     # (B*L1, C1)

    # ---- conv2 (valid, k=3): one matmul for the whole batch ------------------
    # Tap matrix A[b*L2 + t, k*C1 + i] = h1[b*L1 + t + k, i]
    h1_taps = jnp.concatenate(
        [jnp.concatenate([h1[b * L1 + k: b * L1 + k + L2, :] for k in range(K)],
                         axis=1)
         for b in range(B)],
        axis=0)                                                  # (B*L2, K*C1)
    h2 = jnp.maximum(
        jnp.dot(h1_taps, w2, preferred_element_type=jnp.float32) + b2,
        0.0)                                                     # (B*L2, C2)

    # Dropout(p=0.3) in eval mode == identity.
    # ---- global max over sequence positions (torch.max(x, dim=2)[0]) ---------
    feats = jnp.concatenate(
        [jnp.max(h2[b * L2:(b + 1) * L2, :], axis=0, keepdims=True)
         for b in range(B)],
        axis=0)                                                  # (B, C2)

    # ---- fc head --------------------------------------------------------------
    out_ref[...] = (jnp.dot(feats, wf_ref[...], preferred_element_type=jnp.float32)
                    + bf_ref[...])                               # (B, OUT)


# -----------------------------------------------------------------------------
# Wrapper: host-side weight re-layout + single pallas_call (no grid needed).
# -----------------------------------------------------------------------------
def cnn1d_forward(x, torch_params):
    """x: (B, L) float32; torch_params in PyTorch layouts."""
    (w1, b1, w2, b2, wf, bf) = torch_params

    xt = x.astype(jnp.float32).T                                 # (L, B)
    w1m = jnp.transpose(w1[:, 0, :], (1, 0))                     # (K, C1)
    b1r = b1.reshape(1, C1)
    w2m = jnp.transpose(w2, (2, 1, 0)).reshape(K * C1, C2)       # (K*C1, C2)
    b2r = b2.reshape(1, C2)
    wfm = wf.T                                                   # (C2, OUT)
    bfr = bf.reshape(1, OUT)

    return pl.pallas_call(
        _cnn1d_kernel,
        out_shape=jax.ShapeDtypeStruct((B, OUT), jnp.float32),
        # No grid / BlockSpecs: every operand is tiny and lives fully in VMEM,
        # so a single invocation with whole-array blocks is both correct and
        # the fastest option (no per-step overhead, no HBM intermediates).
    )(xt, w1m, b1r, w2m, b2r, wfm, bfr)


# -----------------------------------------------------------------------------
# Pure-JAX reference (torch semantics) for a correctness check.
# -----------------------------------------------------------------------------
def _conv1d_valid_ref(a, w, bias):
    # a: (Cin, Lin), w: (Cout, Cin, K), bias: (Cout,)
    lo = a.shape[1] - w.shape[2] + 1
    out = jnp.zeros((w.shape[0], lo), jnp.float32)
    for k in range(w.shape[2]):
        out = out + w[:, :, k] @ a[:, k:k + lo]
    return out + bias[:, None]


def cnn1d_ref(x, torch_params):
    (w1, b1, w2, b2, wf, bf) = torch_params
    outs = []
    for bi in range(B):
        a = x[bi][None, :]                                       # unsqueeze(1): (1, L)
        h1 = jax.nn.relu(_conv1d_valid_ref(a, w1, b1))           # (C1, L1)
        h2 = jax.nn.relu(_conv1d_valid_ref(h1, w2, b2))          # (C2, L2)
        # Dropout eval == identity
        feat = jnp.max(h2, axis=1)                               # (C2,)
        outs.append(feat @ wf.T + bf)                            # (OUT,)
    return jnp.stack(outs, axis=0)                               # (B, OUT)


# -----------------------------------------------------------------------------
if __name__ == "__main__":
    key = jax.random.PRNGKey(0)
    kx, k1, k2, k3, k4, k5, k6 = jax.random.split(key, 7)

    # torch-convention parameters (deterministic synthetic init)
    x = jax.random.normal(kx, (B, L), jnp.float32)               # (batch, input_size)
    w1 = 0.3 * jax.random.normal(k1, (C1, 1, K), jnp.float32)    # Conv1d(1, 8, 3).weight
    b1 = 0.1 * jax.random.normal(k2, (C1,), jnp.float32)
    w2 = 0.2 * jax.random.normal(k3, (C2, C1, K), jnp.float32)   # Conv1d(8, 16, 3).weight
    b2 = 0.1 * jax.random.normal(k4, (C2,), jnp.float32)
    wf = 0.2 * jax.random.normal(k5, (OUT, C2), jnp.float32)     # Linear(16, 1).weight
    bf = 0.1 * jax.random.normal(k6, (OUT,), jnp.float32)
    params = (w1, b1, w2, b2, wf, bf)

    y = cnn1d_forward(x, params)
    y = jax.block_until_ready(y)

    y_ref = cnn1d_ref(x, params)
    assert y.shape == (B, OUT), y.shape
    assert jnp.allclose(y, y_ref, atol=1e-4, rtol=1e-4), (y, y_ref)

    print("KERNEL_OK")
</pallas_src>

<mosaic_0001>
module attributes {stable_mosaic.version = 11 : i64} {
  func.func @_cnn1d_kernel(%arg0: memref<16x2xf32, #tpu.memory_space<vmem>>, %arg1: memref<3x8xf32, #tpu.memory_space<vmem>>, %arg2: memref<1x8xf32, #tpu.memory_space<vmem>>, %arg3: memref<24x16xf32, #tpu.memory_space<vmem>>, %arg4: memref<1x16xf32, #tpu.memory_space<vmem>>, %arg5: memref<16x1xf32, #tpu.memory_space<vmem>>, %arg6: memref<1x1xf32, #tpu.memory_space<vmem>>, %arg7: memref<2x1xf32, #tpu.memory_space<vmem>>) attributes {dimension_semantics = [], scalar_prefetch = 0 : i64, scratch_operands = 0 : i64, tpu.core_type = #tpu.core_type<tc>} {
    %c0 = arith.constant 0 : index
    %c0_0 = arith.constant 0 : index
    %0 = vector.load %arg0[%c0, %c0_0] : memref<16x2xf32, #tpu.memory_space<vmem>>, vector<16x2xf32>
    %c0_1 = arith.constant 0 : index
    %c0_2 = arith.constant 0 : index
    %1 = vector.load %arg1[%c0_1, %c0_2] : memref<3x8xf32, #tpu.memory_space<vmem>>, vector<3x8xf32>
    %c0_3 = arith.constant 0 : index
    %c0_4 = arith.constant 0 : index
    %2 = vector.load %arg2[%c0_3, %c0_4] : memref<1x8xf32, #tpu.memory_space<vmem>>, vector<1x8xf32>
    %c0_5 = arith.constant 0 : index
    %c0_6 = arith.constant 0 : index
    %3 = vector.load %arg3[%c0_5, %c0_6] : memref<24x16xf32, #tpu.memory_space<vmem>>, vector<24x16xf32>
    %c0_7 = arith.constant 0 : index
    %c0_8 = arith.constant 0 : index
    %4 = vector.load %arg4[%c0_7, %c0_8] : memref<1x16xf32, #tpu.memory_space<vmem>>, vector<1x16xf32>
    %5 = vector.extract_strided_slice %0 {offsets = [0, 0], sizes = [14, 1], strides = [1, 1]} : vector<16x2xf32> to vector<14x1xf32>
    %6 = vector.extract_strided_slice %0 {offsets = [1, 0], sizes = [14, 1], strides = [1, 1]} : vector<16x2xf32> to vector<14x1xf32>
    %7 = vector.extract_strided_slice %0 {offsets = [2, 0], sizes = [14, 1], strides = [1, 1]} : vector<16x2xf32> to vector<14x1xf32>
    %8 = tpu.concatenate %5, %6, %7 in 1 : vector<14x1xf32>, vector<14x1xf32>, vector<14x1xf32> -> vector<14x3xf32>
    %9 = vector.extract_strided_slice %0 {offsets = [0, 1], sizes = [14, 1], strides = [1, 1]} : vector<16x2xf32> to vector<14x1xf32>
    %10 = vector.extract_strided_slice %0 {offsets = [1, 1], sizes = [14, 1], strides = [1, 1]} : vector<16x2xf32> to vector<14x1xf32>
    %11 = vector.extract_strided_slice %0 {offsets = [2, 1], sizes = [14, 1], strides = [1, 1]} : vector<16x2xf32> to vector<14x1xf32>
    %12 = tpu.concatenate %9, %10, %11 in 1 : vector<14x1xf32>, vector<14x1xf32>, vector<14x1xf32> -> vector<14x3xf32>
    %13 = tpu.concatenate %8, %12 in 0 : vector<14x3xf32>, vector<14x3xf32> -> vector<28x3xf32>
    %cst = arith.constant dense<0.000000e+00> : vector<28x8xf32>
    %14 = tpu.matmul %13, %1, %cst {dimension_numbers = #tpu.dot_dimension_numbers<[1], [0], [0], [1], [0, 0, 1, 1], [], []>} : vector<28x3xf32>, vector<3x8xf32>, vector<28x8xf32> -> vector<28x8xf32>
    %15 = vector.broadcast %2 : vector<1x8xf32> to vector<28x8xf32>
    %16 = arith.addf %14, %15 : vector<28x8xf32>
    %cst_9 = arith.constant 0.000000e+00 : f32
    %17 = vector.broadcast %cst_9 : f32 to vector<28x8xf32>
    %18 = arith.maximumf %16, %17 : vector<28x8xf32>
    %19 = vector.extract_strided_slice %18 {offsets = [0, 0], sizes = [12, 8], strides = [1, 1]} : vector<28x8xf32> to vector<12x8xf32>
    %20 = vector.extract_strided_slice %18 {offsets = [1, 0], sizes = [12, 8], strides = [1, 1]} : vector<28x8xf32> to vector<12x8xf32>
    %21 = vector.extract_strided_slice %18 {offsets = [2, 0], sizes = [12, 8], strides = [1, 1]} : vector<28x8xf32> to vector<12x8xf32>
    %22 = tpu.concatenate %19, %20, %21 in 1 : vector<12x8xf32>, vector<12x8xf32>, vector<12x8xf32> -> vector<12x24xf32>
    %23 = vector.extract_strided_slice %18 {offsets = [14, 0], sizes = [12, 8], strides = [1, 1]} : vector<28x8xf32> to vector<12x8xf32>
    %24 = vector.extract_strided_slice %18 {offsets = [15, 0], sizes = [12, 8], strides = [1, 1]} : vector<28x8xf32> to vector<12x8xf32>
    %25 = vector.extract_strided_slice %18 {offsets = [16, 0], sizes = [12, 8], strides = [1, 1]} : vector<28x8xf32> to vector<12x8xf32>
    %26 = tpu.concatenate %23, %24, %25 in 1 : vector<12x8xf32>, vector<12x8xf32>, vector<12x8xf32> -> vector<12x24xf32>
    %27 = tpu.concatenate %22, %26 in 0 : vector<12x24xf32>, vector<12x24xf32> -> vector<24x24xf32>
    %cst_10 = arith.constant dense<0.000000e+00> : vector<24x16xf32>
    %28 = tpu.matmul %27, %3, %cst_10 {dimension_numbers = #tpu.dot_dimension_numbers<[1], [0], [0], [1], [0, 0, 1, 1], [], []>} : vector<24x24xf32>, vector<24x16xf32>, vector<24x16xf32> -> vector<24x16xf32>
    %29 = vector.broadcast %4 : vector<1x16xf32> to vector<24x16xf32>
    %30 = arith.addf %28, %29 : vector<24x16xf32>
    %cst_11 = arith.constant 0.000000e+00 : f32
    %31 = vector.broadcast %cst_11 : f32 to vector<24x16xf32>
    %32 = arith.maximumf %30, %31 : vector<24x16xf32>
    %33 = vector.extract_strided_slice %32 {offsets = [0, 0], sizes = [12, 16], strides = [1, 1]} : vector<24x16xf32> to vector<12x16xf32>
    %cst_12 = arith.constant dense<0xFF800000> : vector<16xf32>
    %34 = vector.multi_reduction <maximumf>, %33, %cst_12 [0] : vector<12x16xf32> to vector<16xf32>
    %35 = vector.shape_cast %34 : vector<16xf32> to vector<1x16xf32>
    %36 = vector.extract_strided_slice %32 {offsets = [12, 0], sizes = [12, 16], strides = [1, 1]} : vector<24x16xf32> to vector<12x16xf32>
    %cst_13 = arith.constant dense<0xFF800000> : vector<16xf32>
    %37 = vector.multi_reduction <maximumf>, %36, %cst_13 [0] : vector<12x16xf32> to vector<16xf32>
    %38 = vector.shape_cast %37 : vector<16xf32> to vector<1x16xf32>
    %39 = tpu.concatenate %35, %38 in 0 : vector<1x16xf32>, vector<1x16xf32> -> vector<2x16xf32>
    %c0_14 = arith.constant 0 : index
    %c0_15 = arith.constant 0 : index
    %40 = vector.load %arg5[%c0_14, %c0_15] : memref<16x1xf32, #tpu.memory_space<vmem>>, vector<16x1xf32>
    %cst_16 = arith.constant dense<0.000000e+00> : vector<2x1xf32>
    %41 = tpu.matmul %39, %40, %cst_16 {dimension_numbers = #tpu.dot_dimension_numbers<[1], [0], [0], [1], [0, 0, 1, 1], [], []>} : vector<2x16xf32>, vector<16x1xf32>, vector<2x1xf32> -> vector<2x1xf32>
    %c0_17 = arith.constant 0 : index
    %c0_18 = arith.constant 0 : index
    %42 = vector.load %arg6[%c0_17, %c0_18] : memref<1x1xf32, #tpu.memory_space<vmem>>, vector<1x1xf32>
    %43 = vector.broadcast %42 : vector<1x1xf32> to vector<2x1xf32>
    %44 = arith.addf %41, %43 : vector<2x1xf32>
    %c0_19 = arith.constant 0 : index
    %c0_20 = arith.constant 0 : index
    %45 = vector.load %arg7[%c0_19, %c0_20] : memref<2x1xf32, #tpu.memory_space<vmem>>, vector<2x1xf32>
    tpu.vector_store %arg7[%c0_19, %c0_20], %44 {strides = array<i32>} : memref<2x1xf32, #tpu.memory_space<vmem>>, vector<2x1xf32>,
    return
  }
}

</mosaic_0001>

<bundles_post_ra>
// kernel: tpu_custom_call.1
= control target key start
LH: loop header
LB: loop body
LE: loop exit
PB: predicated region body
PF: predicated region fallthrough
CT: control target
= control target key end

     0   :  { %vm48_vm0 = vcmask 1045504   ;;  %vm38_vm1 = vcmask 1046528   ;;  %s547_s30 = smov 127   ;;  %vm106_vm2 = vcmask 1042432   ;;  %s548_s8 = smov 1   ;;  %vm58_vm3 = vcmask 7168   ;;  %s679_s0 = inlined_call_operand.vmem [shape: f32[16,2], index: 0, kind: input, shape index: {}]   ;;  %s680_s1 = inlined_call_operand.vmem [shape: f32[3,8], index: 1, kind: input, shape index: {}]   ;;  %s681_s3 = inlined_call_operand.vmem [shape: f32[24,16], index: 3, kind: input, shape index: {}]   ;;  %s682_s2 = inlined_call_operand.vmem [shape: f32[1,8], index: 2, kind: input, shape index: {}]   ;;  %s683_s5 = inlined_call_operand.vmem [shape: f32[16,1], index: 5, kind: input, shape index: {}]   ;;  %s684_s6 = inlined_call_operand.<no memory space> [shape: f32[1,1], index: 6, kind: input, shape index: {}]   ;;  %s685_s4 = inlined_call_operand.vmem [shape: f32[1,16], index: 4, kind: input, shape index: {}]   ;;  %s686_s7 = inlined_call_operand.vmem [shape: f32[2,1], index: 7, kind: output, shape index: {}]  }
   0x1   :  { %v28_v0 = vld [vmem:[%s679_s0] sm:$0xff]  ;;  %v29_v1 = vld [vmem:[%s679_s0 + $0x8] sm:$0xff]  ;;  %s549_s0 = smov 2   ;;  %vm61_vm4 = vcmask 15360   ;;  %vm95_vm5 = vcmask 23552   ;;  %v550_v29 = vmov 0.0|0.0  }
   0x2   :  { %v30_v2 = vld [vmem:[%s680_s1] sm:$0x7]  ;;  %64 = vrot.lane.b32.xlu0 %v28_v0, %s547_s30  ;;  %v40_v3 = vrot.slane %v29_v1, 1  ;;  %v49_v4 = vrot.slane %v28_v0, 2  ;;  %v50_v5 = vrot.slane %v29_v1, 2  ;;  %v39_v6 = vrot.slane %v28_v0, 1  ;;  %533 = vmatprep.subr.bf16.mxu1 %v550_v29 }
   0x3   :  { %503 = vmatprep.subr.msk.mxu0 %vm106_vm2, %v30_v2  ;;  %v32_v30 = vld [vmem:[%s681_s3] sm:$0xff]  ;;  %v33_v31 = vld [vmem:[%s681_s3 + $0x8] sm:$0xff]  ;;  %v551_v33 = vmov 0.0   ;;  %v34_v34 = vld [vmem:[%s681_s3 + $0x10] sm:$0xff]  ;;  %vm552_vm6 = vmmov 0   ;;  %s554_s3 = smov 8  }
   0x4   :  { %44 = vrot.lane.b32.xlu1 %v40_v3, %s548_s8  ;;  %v51_v7 = vsel %vm48_vm0, %v49_v4, %v50_v5  ;;  %v41_v8 = vsel %vm38_vm1, %v39_v6, %v40_v3  ;;  %504 = vmatpush3.msk.msra.mxu0 %vm106_vm2, %v30_v2  ;;  %v534_v32 = vpack.c.bf16 %v33_v31, %v32_v30  ;;  %v477_v35 = vld [vmem:[%s682_s2] ss:$0 sm:$0xff]  ;;  %s553_s2 = smov 16   ;;  %vm219_vm7 = vcmask 64512  }
   0x5   :  { %536 = vmatprep.subr.bf16.mxu0 %v550_v29  ;;  %517 = vmatprep.mubr.msk.f32.mxu1 %vm552_vm6, %v551_v33  ;;  %vm222_vm8 = vcmask 130048   ;;  %vm275_vm9 = vcmask 195584   ;;  %vm267_vm10 = vcmask 1043456   ;;  %v483_v29 = vld [vmem:[%s685_s4] ss:$0 sm:$0xff]  ;;  %vm368_vm11 = vcmask 125952  }
   0x6   :  { %72 = vrot.lane.b32.xlu0 %v51_v7, %s548_s8  ;;  %535 = vmatpush3.bf16.msra.mxu1 %v534_v32  ;;  %vm377_vm12 = vcmask 130052   ;;  %vm387_vm13 = vcmask 1040384   ;;  %vm471_vm14 = vcmask 1024  }
   0x7   :  { %515 = vmatprep.subr.mxu1 %v551_v33 }
   0x8   :  { %42 = vrot.lane.b32.xlu1 %v41_v8, %s548_s8 }
   0xa   :  { %52 = vrot.lane.b32.xlu0 %v51_v7, %s549_s0  ;;  %516 = vmatpush3.msra.mxu1 %v34_v34 }
   0xc   :  { %54 = vrot.lane.b32.xlu1 %v50_v5, %s549_s0 }
   0xe   :  { %66 = vrot.lane.b32.xlu0 %v29_v1, %s547_s30 }
  0x10   :  { %74 = vrot.lane.b32.xlu1 %v50_v5, %s548_s8 }
  0x74   :  { %v65_v9 = vpop.permute.xlu0 %64 }
  0x75   :  { %v78_v12 = vsel %vm58_vm3, %v65_v9, %v41_v8 }
  0x76   :  { %v45_v10 = vpop.permute.xlu1 %44 }
  0x77   :  { %v60_v18 = vsel %vm58_vm3, %v29_v1, %v45_v10 }
  0x78   :  { %v73_v11 = vpop.permute.xlu0 %72 }
  0x79   :  { %v80_v14 = vsel %vm61_vm4, %v78_v12, %v73_v11 }
  0x7a   :  { %v43_v13 = vpop.permute.xlu1 %42  ;;  %v84_v19 = vrot.slane %v80_v14, 2 }
  0x7b   :  { %v59_v15 = vsel %vm58_vm3, %v28_v0, %v43_v13 }
  0x7c   :  { %v53_v16 = vpop.permute.xlu0 %52 }
  0x7d   :  { %v62_v17 = vsel %vm61_vm4, %v59_v15, %v53_v16 }
  0x7e   :  { %505 = vmatprep.mubr.msk.f32.mxu0 %vm95_vm5, %v62_v17  ;;  %v55_v20 = vpop.permute.xlu1 %54 }
  0x7f   :  { %v63_v21 = vsel %vm61_vm4, %v60_v18, %v55_v20 }
  0x80   :  { %v67_v22 = vpop.permute.xlu0 %66  ;;  %v88_v23 = vsel %vm48_vm0, %v63_v21, %v84_v19 }
  0x81   :  { %v79_v24 = vsel %vm58_vm3, %v67_v22, %v40_v3  ;;  %506 = vmatmul.mubr.msk.f32.vlgmr.msra.gmra.mrb[0].mxu0 %vm95_vm5, %v88_v23  ;;  %v389_v23 = vld [vmem:[%s683_s5] sm:$0xff] }
  0x82   :  { %v75_v25 = vpop.permute.xlu1 %74 }
  0x83   :  { %v81_v26 = vsel %vm61_vm4, %v79_v24, %v75_v25  ;;  %v390_v24 = vld [vmem:[%s683_s5 + $0x8] sm:$0xff] }
  0x84   :  { %v85_v27 = vrot.slane %v81_v26, 2  ;;  %v537_v25 = vpack.c.bf16 %v390_v24, %v389_v23  ;;  %v12_v26 = vstv %s684_s6 }
  0x85   :  { %13 = vst [vmem:[#allocation2] sm:$0x1] %v12_v26 }
  0x86   :  { %v86_v28 = vsel %vm48_vm0, %v84_v19, %v85_v27  ;;  %538 = vmatpush3.bf16.msra.mxu0 %v537_v25 }
  0x87   :  { %508 = vmatprep.mubr.msk.f32.mxu0 %vm95_vm5, %v86_v28 }
  0x88   :  { %509 = vmatmul.mubr.msk.f32.gmra.mrb[2].mxu0 %vm95_vm5, %v85_v27 }
  0x89   :  { %530 = vmatprep.mubr.msk.f32.mxu0 %vm552_vm6, %v551_v33 }
 0x154   :  { %v507_v36 = vpop.f32.mrb[0].mxu0 }
 0x155   :  { %v182_v37 = vadd.f32 %v507_v36, %v477_v35  ;;  %v176_v38 = vpop.f32.mrb[1].mxu0 }
 0x156   :  { %v177_v39 = vadd.f32 %v477_v35, %v176_v38 }
 0x157   :  { %v196_v40 = vmax.f32 %v182_v37, 0.0 }
 0x158   :  { %v195_v41 = vmax.f32 %v177_v39, 0.0 }
 0x159   :  { %v211_v42 = vrot.slane %v196_v40, 2  ;;  %v202_v43 = vrot.slane %v196_v40, 1 }
 0x15a   :  { %v201_v44 = vrot.slane %v195_v41, 1  ;;  %v210_v45 = vrot.slane %v195_v41, 2 }
 0x15b   :  { %v510_v46 = vpop.f32.mrb[2].mxu0 }
 0x15c   :  { %v192_v47 = vadd.f32 %v510_v46, %v477_v35  ;;  %v186_v48 = vpop.f32.mrb[3].mxu0  ;;  %v212_v49 = vsel %vm48_vm0, %v210_v45, %v211_v42  ;;  %v203_v50 = vsel %vm38_vm1, %v201_v44, %v202_v43 }
 0x15d   :  { %v187_v51 = vadd.f32 %v477_v35, %v186_v48  ;;  %213 = vrot.lane.b32.xlu1 %v212_v49, %s553_s2  ;;  %204 = vrot.lane.b32.xlu0 %v203_v50, %s554_s3 }
 0x15e   :  { %v198_v52 = vmax.f32 %v192_v47, 0.0 }
 0x15f   :  { %v197_v53 = vmax.f32 %v187_v51, 0.0 }
 0x160   :  { %v229_v56 = vrot.slane %v198_v52, 1  ;;  %v241_v57 = vrot.slane %v198_v52, 2 }
 0x161   :  { %v227_v54 = vrot.slane %v197_v53, 1  ;;  %v240_v55 = vrot.slane %v197_v53, 2 }
 0x163   :  { %243 = vrot.lane.b32.xlu0 %v240_v55, %s553_s2  ;;  %v228_v58 = vsel %vm38_vm1, %v202_v43, %v227_v54  ;;  %v230_v59 = vsel %vm38_vm1, %v227_v54, %v229_v56  ;;  %v242_v60 = vsel %vm48_vm0, %v240_v55, %v241_v57 }
 0x164   :  { %231 = vrot.lane.b32.xlu1 %v228_v58, %s554_s3 }
 0x167   :  { %233 = vrot.lane.b32.xlu0 %v230_v59, %s554_s3  ;;  %v487_v59 = vld [vmem:[#allocation2] ss:$0 sm:$0xff] }
 0x168   :  { %245 = vrot.lane.b32.xlu1 %v242_v60, %s553_s2 }
 0x16b   :  { %206 = vrot.lane.b32.xlu0 %v202_v43, %s554_s3 }
 0x16c   :  { %215 = vrot.lane.b32.xlu1 %v211_v42, %s553_s2 }
 0x16f   :  { %235 = vrot.lane.b32.xlu0 %v229_v56, %s554_s3 }
 0x170   :  { %247 = vrot.lane.b32.xlu1 %v241_v57, %s553_s2 }
 0x1cf   :  { %v214_v61 = vpop.permute.xlu1 %213  ;;  %v205_v62 = vpop.permute.xlu0 %204 }
 0x1d0   :  { %v220_v63 = vsel %vm219_vm7, %v195_v41, %v205_v62 }
 0x1d1   :  { %v223_v0 = vsel %vm222_vm8, %v220_v63, %v214_v61 }
 0x1d2   :  { %518 = vmatmul.mubr.msk.f32.vlgmr.msra.gmra.mrb[0].mxu1 %vm275_vm9, %v223_v0 }
 0x1d3   :  { %520 = vmatprep.mubr.msk.f32.mxu1 %vm552_vm6, %v551_v33 }
 0x1d5   :  { %v244_v1 = vpop.permute.xlu0 %243 }
 0x1d6   :  { %v232_v2 = vpop.permute.xlu1 %231 }
 0x1d7   :  { %v252_v3 = vsel %vm219_vm7, %v196_v40, %v232_v2 }
 0x1d8   :  { %v255_v4 = vsel %vm222_vm8, %v252_v3, %v244_v1 }
 0x1d9   :  { %v234_v5 = vpop.permute.xlu0 %233  ;;  %v261_v9 = vrot.slane %v255_v4, 2 }
 0x1da   :  { %v253_v6 = vsel %vm219_vm7, %v197_v53, %v234_v5  ;;  %v246_v7 = vpop.permute.xlu1 %245 }
 0x1db   :  { %v256_v8 = vsel %vm222_vm8, %v253_v6, %v246_v7 }
 0x1dc   :  { %v262_v10 = vrot.slane %v256_v8, 2 }
 0x1dd   :  { %v207_v11 = vpop.permute.xlu0 %206 }
 0x1de   :  { %v221_v12 = vsel %vm219_vm7, %v196_v40, %v207_v11  ;;  %v216_v13 = vpop.permute.xlu1 %215  ;;  %v263_v14 = vsel %vm48_vm0, %v261_v9, %v262_v10 }
 0x1df   :  { %v224_v15 = vsel %vm222_vm8, %v221_v12, %v216_v13 }
 0x1e0   :  { %v268_v16 = vsel %vm267_vm10, %v224_v15, %v263_v14 }
 0x1e1   :  { %v236_v17 = vpop.permute.xlu0 %235  ;;  %521 = vmatmul.mubr.msk.f32.gmra.mrb[2].mxu1 %vm275_vm9, %v268_v16 }
 0x1e2   :  { %v254_v18 = vsel %vm219_vm7, %v198_v52, %v236_v17  ;;  %v248_v19 = vpop.permute.xlu1 %247  ;;  %523 = vmatprep.mubr.msk.f32.mxu1 %vm552_vm6, %v551_v33 }
 0x1e3   :  { %v257_v20 = vsel %vm222_vm8, %v254_v18, %v248_v19 }
 0x1e4   :  { %v264_v21 = vrot.slane %v257_v20, 2 }
 0x1e6   :  { %v265_v22 = vsel %vm48_vm0, %v262_v10, %v264_v21 }
 0x1e7   :  { %524 = vmatmul.mubr.msk.f32.gmra.mrb[4].mxu1 %vm275_vm9, %v265_v22 }
 0x2a5   :  { %v350_v27 = vpop.f32.mrb[0].mxu1 }
 0x2a6   :  { %v519_v28 = vpop.f32.mrb[1].mxu1  ;;  %v351_v30 = vadd.f32 %v483_v29, %v350_v27 }
 0x2a8   :  { %v364_v32 = vmax.f32 %v351_v30, 0.0 }
 0x2aa   :  { %v367_v36 = vsel %vm222_vm8, %v364_v32, -inf }
 0x2b4   :  { %v355_v31 = vpop.f32.mrb[2].mxu1 }
 0x2b5   :  { %v356_v33 = vadd.f32 %v483_v29, %v355_v31  ;;  %v522_v34 = vpop.f32.mrb[3].mxu1 }
 0x2b7   :  { %v365_v35 = vmax.f32 %v356_v33, 0.0 }
 0x2b9   :  { %v369_v37 = vsel %vm368_vm11, %v365_v35, -inf  ;;  %v378_v45 = vsel %vm377_vm12, %v365_v35, -inf }
 0x2ba   :  { %v370_v38 = vmax.f32 %v367_v36, %v369_v37  ;;  %v360_v39 = vpop.f32.mrb[4].mxu1 }
 0x2bb   :  { %v361_v40 = vadd.f32 %v483_v29, %v360_v39  ;;  %v525_v41 = vpop.f32.mrb[5].mxu1 }
 0x2bc   :  { %v371_v42 = vrot.slane %v370_v38, 4 }
 0x2bd   :  { %v366_v43 = vmax.f32 %v361_v40, 0.0 }
 0x2be   :  { %v372_v44 = vmax.f32 %v370_v38, %v371_v42 }
 0x2bf   :  { %v379_v46 = vsel %vm222_vm8, %v366_v43, -inf }
 0x2c0   :  { %v373_v47 = vrot.slane %v372_v44, 2  ;;  %v380_v48 = vmax.f32 %v378_v45, %v379_v46 }
 0x2c2   :  { %v381_v49 = vrot.slane %v380_v48, 4  ;;  %v374_v50 = vmax.f32 %v372_v44, %v373_v47 }
 0x2c4   :  { %v382_v51 = vmax.f32 %v380_v48, %v381_v49  ;;  %v375_v53 = vrot.slane %v374_v50, 1 }
 0x2c6   :  { %v383_v52 = vrot.slane %v382_v51, 2  ;;  %v376_v56 = vmax.f32 %v374_v50, %v375_v53 }
 0x2c8   :  { %v384_v54 = vmax.f32 %v382_v51, %v383_v52 }
 0x2ca   :  { %v385_v55 = vrot.slane %v384_v54, 1 }
 0x2cc   :  { %v386_v57 = vmax.f32 %v384_v54, %v385_v55 }
 0x2ce   :  { %v388_v58 = vsel %vm387_vm13, %v376_v56, %v386_v57 }
 0x2cf   :  { %531 = vmatmul.mubr.msk.f32.vlgmr.msra.gmra.mrb[4].mxu0 %vm222_vm8, %v388_v58 }
 0x3a2   :  { %v467_v60 = vpop.f32.mrb[4].mxu0 }
 0x3a3   :  { %v468_v61 = vadd.f32 %v487_v59, %v467_v60  ;;  %v532_v62 = vpop.f32.mrb[5].mxu0 }
 0x3a5   :  { %472 = vst.msk [vmem:[%s686_s7] sm:$0x3] %vm471_vm14, %v468_v61 }

</bundles_post_ra>
